<compile_context>
chip_gen: v7x
topology: tpu7x:2x2x1
jax: 0.10.0
libtpu: 0.0.40
codegen_flags: <defaults>
</compile_context>

<pallas_src>
import functools

import jax
import jax.numpy as jnp
from jax.experimental import pallas as pl
from jax.experimental.pallas import tpu as pltpu

CIN_PAD = 8  # pad the tiny input-channel dim (input_size=1) once, HBM-side


# ------------------------------- kernel -------------------------------------


def _tcn_fused_kernel(x_ref, *rest, K, dilations, has_downsample, compute_dtype):
    """Fused TCN forward.

    x_ref:  (BB, T, C0)      batch tile of the (channel-padded) input
    rest:   6 weight refs per TemporalBlock (w1,b1,w2,b2,wd,bd),
            then wp (C_last,E, already scaled by 1/T), bp (1,E),
            then o_ref (1, BB, E) output block,
            then pad_ref (BB, PMAX+T, Cmax) VMEM scratch (causal halo + staging).
    """
    n_blocks = len(dilations)
    blk_refs = rest[: 6 * n_blocks]
    wp_ref, bp_ref, o_ref, pad_ref = rest[6 * n_blocks:]

    BB, T, _ = x_ref.shape
    PMAX = pad_ref.shape[1] - T
    f32 = jnp.float32

    # Zero the causal halo once per grid step.  It is never written again, so every
    # conv below sees zeros for t < shift (== Conv1d left padding + Chomp1d).
    if PMAX > 0:
        pad_ref[:, :PMAX, :] = jnp.zeros((BB, PMAX, pad_ref.shape[2]), f32)

    def causal_conv(h, w_ref, b_ref, d):
        # Conv1d(stride=1, dilation=d, padding=(K-1)*d) + Chomp1d == left-padded
        # causal dilated conv, with all K taps folded into one MXU matmul.
        cin = h.shape[-1]
        cout = w_ref.shape[-1]
        pad_ref[:, PMAX:, :cin] = h                       # stage behind the zero halo
        buf = pad_ref[...]
        taps = [
            buf[:, PMAX - (K - 1 - k) * d: PMAX - (K - 1 - k) * d + T, :cin]
            for k in range(K)
        ]
        op = jnp.concatenate(taps, axis=-1).reshape(BB * T, K * cin)
        acc = jnp.dot(op.astype(compute_dtype), w_ref[...],
                      preferred_element_type=f32) + b_ref[...]
        return acc.reshape(BB, T, cout)

    h = x_ref[...].astype(f32)
    for i in range(n_blocks):
        w1, b1, w2, b2, wd, bd = blk_refs[6 * i: 6 * i + 6]
        d = dilations[i]
        a1 = jnp.maximum(causal_conv(h, w1, b1, d), 0.0)   # conv1 -> chomp -> relu
        a2 = jnp.maximum(causal_conv(a1, w2, b2, d), 0.0)  # conv2 -> chomp -> relu
        if has_downsample[i]:                              # 1x1 downsample residual
            cin = h.shape[-1]
            res = jnp.dot(h.reshape(BB * T, cin).astype(compute_dtype), wd[...],
                          preferred_element_type=f32) + bd[...]
            res = res.reshape(BB, T, a2.shape[-1])
        else:                                              # identity residual (cin==cout)
            res = h
        h = jnp.maximum(a2 + res, 0.0)                     # relu(out + res)

    # Head epilogue: mean over time (1/T already folded into wp) + Linear, fp32.
    feat = jnp.sum(h, axis=1)                              # (BB, C_last)
    emb = jnp.dot(feat, wp_ref[...], preferred_element_type=f32) + bp_ref[...]
    o_ref[...] = emb[None, :, :].astype(o_ref.dtype)


# ------------------------------- wrapper -------------------------------------


def tcn_encoder_forward(x_ncl, params, *, kernel_size=3, batch_block=8,
                        compute_dtype=jnp.bfloat16):
    """x_ncl: (B, input_size, L) as in PyTorch; returns (B, emb_dim)."""
    B, C, L = x_ncl.shape
    T = L
    K = kernel_size
    f32 = jnp.float32

    # Channels-last + one-time HBM-side channel pad (weights carry matching zero rows).
    x = jnp.transpose(x_ncl, (0, 2, 1)).astype(f32)        # (B, T, C)
    c0 = max(C, CIN_PAD)
    if c0 > C:
        x = jnp.pad(x, ((0, 0), (0, 0), (0, c0 - C)))

    # Batch tiling.
    BB = min(batch_block, B)
    NB = pl.cdiv(B, BB)
    if NB * BB != B:
        x = jnp.pad(x, ((0, NB * BB - B), (0, 0), (0, 0)))

    # Weight prep: fold taps -> (K*Cin, Cout), cast matmul weights to bf16,
    # fold 1/T into the projection weight.  Biases stay fp32.
    dilations, has_ds, flat_w = [], [], []
    cmax = c0
    for i, blk in enumerate(params["blocks"]):
        d = 2 ** i
        w1, b1, w2, b2 = blk["w1"], blk["b1"], blk["w2"], blk["b2"]
        cout = w1.shape[-1]
        if blk["downsample"] is not None:
            wd, bd = blk["downsample"]
            has_ds.append(True)
        else:
            wd = jnp.eye(cout, dtype=f32)
            bd = jnp.zeros((1, cout), f32)
            has_ds.append(False)
        flat_w += [
            w1.reshape(K * w1.shape[1], cout).astype(compute_dtype),
            b1.astype(f32),
            w2.reshape(K * cout, cout).astype(compute_dtype),
            b2.astype(f32),
            wd.astype(compute_dtype),
            bd.astype(f32),
        ]
        dilations.append(d)
        cmax = max(cmax, cout)
    wp = (params["proj_w"] / T).astype(f32)                # fold mean's 1/T
    bp = params["proj_b"].astype(f32)
    E = wp.shape[-1]

    # Causal halo rows, rounded up to a sublane multiple so scratch stores are aligned.
    PMAX = -(-((K - 1) * max(dilations)) // 8) * 8

    kern = functools.partial(
        _tcn_fused_kernel, K=K, dilations=tuple(dilations),
        has_downsample=tuple(has_ds), compute_dtype=compute_dtype)

    w_specs = [pl.BlockSpec(w.shape, lambda b: (0, 0)) for w in flat_w]
    w_specs += [pl.BlockSpec(wp.shape, lambda b: (0, 0)),
                pl.BlockSpec(bp.shape, lambda b: (0, 0))]

    out3 = pl.pallas_call(
        kern,
        out_shape=jax.ShapeDtypeStruct((NB, BB, E), f32),
        grid_spec=pltpu.PrefetchScalarGridSpec(
            num_scalar_prefetch=0,
            grid=(NB,),
            in_specs=[pl.BlockSpec((BB, T, c0), lambda b: (b, 0, 0))] + w_specs,
            out_specs=pl.BlockSpec((1, BB, E), lambda b: (b, 0, 0)),
            scratch_shapes=[pltpu.VMEM((BB, PMAX + T, cmax), f32)],
        ),
        compiler_params=pltpu.CompilerParams(
            dimension_semantics=("parallel",)),
    )(x, *flat_w, wp, bp)

    return out3.reshape(NB * BB, E)[:B]


# ------------------------------ parameters -----------------------------------


def _uniform(key, shape, bound):
    return jax.random.uniform(key, shape, jnp.float32, -bound, bound)


def init_params(key, input_size=1, num_channels=(16, 32), kernel_size=3, emb_dim=64):
    """PyTorch-default-style init (U(-1/sqrt(fan_in), +1/sqrt(fan_in)))."""
    blocks = []
    in_ch = input_size
    for out_ch in num_channels:
        key, k1, k2, k3, k4, k5, k6 = jax.random.split(key, 7)
        cin_p = max(in_ch, CIN_PAD)
        b1s = 1.0 / float(in_ch * kernel_size) ** 0.5
        w1 = _uniform(k1, (kernel_size, in_ch, out_ch), b1s)
        if cin_p > in_ch:
            w1 = jnp.pad(w1, ((0, 0), (0, cin_p - in_ch), (0, 0)))
        b1 = _uniform(k2, (1, out_ch), b1s)
        b2s = 1.0 / float(out_ch * kernel_size) ** 0.5
        w2 = _uniform(k3, (kernel_size, out_ch, out_ch), b2s)
        b2 = _uniform(k4, (1, out_ch), b2s)
        if in_ch != out_ch:                                 # matches PyTorch TemporalBlock
            bds = 1.0 / float(in_ch) ** 0.5
            wd = _uniform(k5, (in_ch, out_ch), bds)
            if cin_p > in_ch:
                wd = jnp.pad(wd, ((0, cin_p - in_ch), (0, 0)))
            bd = _uniform(k6, (1, out_ch), bds)
            ds = (wd, bd)
        else:
            ds = None                                       # identity residual
        blocks.append({"w1": w1, "b1": b1, "w2": w2, "b2": b2, "downsample": ds})
        in_ch = out_ch
    key, kp1, kp2 = jax.random.split(key, 3)
    bound = 1.0 / float(in_ch) ** 0.5
    proj_w = _uniform(kp1, (in_ch, emb_dim), bound)
    proj_b = _uniform(kp2, (1, emb_dim), bound)
    return {"blocks": blocks, "proj_w": proj_w, "proj_b": proj_b}


# ------------------------------ reference ------------------------------------


def _reference_forward(x_ncl, params, *, kernel_size=3):
    """Pure-JAX (non-Pallas) reference of the PyTorch forward, fp32."""
    K = kernel_size
    x = jnp.transpose(x_ncl, (0, 2, 1)).astype(jnp.float32)
    B, T, C = x.shape
    c0 = max(C, CIN_PAD)
    if c0 > C:
        x = jnp.pad(x, ((0, 0), (0, 0), (0, c0 - C)))
    h = x
    for i, blk in enumerate(params["blocks"]):
        d = 2 ** i
        P = (K - 1) * d

        def conv(a, w, b):
            ap = jnp.pad(a, ((0, 0), (P, 0), (0, 0)))
            out = sum(jnp.einsum("btc,cd->btd", ap[:, k * d:k * d + T, :], w[k])
                      for k in range(K))
            return out + b

        a1 = jax.nn.relu(conv(h, blk["w1"], blk["b1"]))
        a2 = jax.nn.relu(conv(a1, blk["w2"], blk["b2"]))
        if blk["downsample"] is not None:
            wd, bd = blk["downsample"]
            res = jnp.einsum("btc,cd->btd", h, wd) + bd
        else:
            res = h
        h = jax.nn.relu(a2 + res)
    feat = jnp.mean(h, axis=1)
    return feat @ params["proj_w"] + params["proj_b"]


# --------------------------------- main --------------------------------------


if __name__ == "__main__":
    key = jax.random.PRNGKey(0)
    kp, kx = jax.random.split(key)

    params = init_params(kp, input_size=1, num_channels=(16, 32),
                         kernel_size=3, emb_dim=64)

    B, C_in, L = 4, 1, 16                                   # small (batch, input_size, seq_len)
    x = jax.random.normal(kx, (B, C_in, L), dtype=jnp.float32)

    emb = tcn_encoder_forward(x, params, kernel_size=3, batch_block=2)
    emb = jax.block_until_ready(emb)

    assert emb.shape == (B, 64), emb.shape
    assert bool(jnp.all(jnp.isfinite(emb)))

    ref = _reference_forward(x, params, kernel_size=3)
    err = float(jnp.max(jnp.abs(emb - ref)))
    assert bool(jnp.allclose(emb, ref, rtol=5e-2, atol=5e-2)), f"max abs err {err}"

    print("KERNEL_OK")
</pallas_src>

<mosaic_0001>
module attributes {stable_mosaic.version = 11 : i64} {
  func.func @_tcn_fused_kernel(%arg0: i32, %arg1: memref<2x16x8xf32, #tpu.memory_space<vmem>>, %arg2: memref<24x16xbf16, #tpu.memory_space<vmem>>, %arg3: memref<1x16xf32, #tpu.memory_space<vmem>>, %arg4: memref<48x16xbf16, #tpu.memory_space<vmem>>, %arg5: memref<1x16xf32, #tpu.memory_space<vmem>>, %arg6: memref<8x16xbf16, #tpu.memory_space<vmem>>, %arg7: memref<1x16xf32, #tpu.memory_space<vmem>>, %arg8: memref<48x32xbf16, #tpu.memory_space<vmem>>, %arg9: memref<1x32xf32, #tpu.memory_space<vmem>>, %arg10: memref<96x32xbf16, #tpu.memory_space<vmem>>, %arg11: memref<1x32xf32, #tpu.memory_space<vmem>>, %arg12: memref<16x32xbf16, #tpu.memory_space<vmem>>, %arg13: memref<1x32xf32, #tpu.memory_space<vmem>>, %arg14: memref<32x64xf32, #tpu.memory_space<vmem>>, %arg15: memref<1x64xf32, #tpu.memory_space<vmem>>, %arg16: memref<1x2x64xf32, #tpu.memory_space<vmem>>, %arg17: memref<2x24x32xf32, #tpu.memory_space<vmem>>) attributes {dimension_semantics = [#tpu.dimension_semantics<parallel>], iteration_bounds = array<i64: 2>, scalar_prefetch = 0 : i64, scratch_operands = 1 : i64, tpu.core_type = #tpu.core_type<tc>, window_params = [{transform_indices = @transform_0, window_bounds = array<i64: 2, 16, 8>}, {pipeline_mode = #tpu.pipeline_mode<synchronous>, transform_indices = @transform_1, window_bounds = array<i64: 24, 16>}, {pipeline_mode = #tpu.pipeline_mode<synchronous>, transform_indices = @transform_2, window_bounds = array<i64: 1, 16>}, {pipeline_mode = #tpu.pipeline_mode<synchronous>, transform_indices = @transform_3, window_bounds = array<i64: 48, 16>}, {pipeline_mode = #tpu.pipeline_mode<synchronous>, transform_indices = @transform_4, window_bounds = array<i64: 1, 16>}, {pipeline_mode = #tpu.pipeline_mode<synchronous>, transform_indices = @transform_5, window_bounds = array<i64: 8, 16>}, {pipeline_mode = #tpu.pipeline_mode<synchronous>, transform_indices = @transform_6, window_bounds = array<i64: 1, 16>}, {pipeline_mode = #tpu.pipeline_mode<synchronous>, transform_indices = @transform_7, window_bounds = array<i64: 48, 32>}, {pipeline_mode = #tpu.pipeline_mode<synchronous>, transform_indices = @transform_8, window_bounds = array<i64: 1, 32>}, {pipeline_mode = #tpu.pipeline_mode<synchronous>, transform_indices = @transform_9, window_bounds = array<i64: 96, 32>}, {pipeline_mode = #tpu.pipeline_mode<synchronous>, transform_indices = @transform_10, window_bounds = array<i64: 1, 32>}, {pipeline_mode = #tpu.pipeline_mode<synchronous>, transform_indices = @transform_11, window_bounds = array<i64: 16, 32>}, {pipeline_mode = #tpu.pipeline_mode<synchronous>, transform_indices = @transform_12, window_bounds = array<i64: 1, 32>}, {pipeline_mode = #tpu.pipeline_mode<synchronous>, transform_indices = @transform_13, window_bounds = array<i64: 32, 64>}, {pipeline_mode = #tpu.pipeline_mode<synchronous>, transform_indices = @transform_14, window_bounds = array<i64: 1, 64>}, {transform_indices = @transform_15, window_bounds = array<i64: 1, 2, 64>}]} {
    %cst = arith.constant 0.000000e+00 : f32
    %0 = vector.broadcast %cst : f32 to vector<2x8x32xf32>
    %c0 = arith.constant 0 : index
    %c0_0 = arith.constant 0 : index
    %c0_1 = arith.constant 0 : index
    %1 = vector.load %arg17[%c0, %c0_0, %c0_1] : memref<2x24x32xf32, #tpu.memory_space<vmem>>, vector<2x8x32xf32>
    tpu.vector_store %arg17[%c0, %c0_0, %c0_1], %0 {strides = array<i32>} : memref<2x24x32xf32, #tpu.memory_space<vmem>>, vector<2x8x32xf32>,
    %c0_2 = arith.constant 0 : index
    %c0_3 = arith.constant 0 : index
    %c0_4 = arith.constant 0 : index
    %2 = vector.load %arg1[%c0_2, %c0_3, %c0_4] : memref<2x16x8xf32, #tpu.memory_space<vmem>>, vector<2x16x8xf32>
    %c0_5 = arith.constant 0 : index
    %c8 = arith.constant 8 : index
    %c0_6 = arith.constant 0 : index
    %3 = vector.load %arg17[%c0_5, %c8, %c0_6] : memref<2x24x32xf32, #tpu.memory_space<vmem>>, vector<2x16x8xf32>
    tpu.vector_store %arg17[%c0_5, %c8, %c0_6], %2 {strides = array<i32>} : memref<2x24x32xf32, #tpu.memory_space<vmem>>, vector<2x16x8xf32>,
    %c0_7 = arith.constant 0 : index
    %c0_8 = arith.constant 0 : index
    %c0_9 = arith.constant 0 : index
    %4 = vector.load %arg17[%c0_7, %c0_8, %c0_9] : memref<2x24x32xf32, #tpu.memory_space<vmem>>, vector<2x24x32xf32>
    %5 = vector.extract_strided_slice %4 {offsets = [0, 6, 0], sizes = [2, 16, 8], strides = [1, 1, 1]} : vector<2x24x32xf32> to vector<2x16x8xf32>
    %6 = vector.extract_strided_slice %4 {offsets = [0, 7, 0], sizes = [2, 16, 8], strides = [1, 1, 1]} : vector<2x24x32xf32> to vector<2x16x8xf32>
    %7 = vector.extract_strided_slice %4 {offsets = [0, 8, 0], sizes = [2, 16, 8], strides = [1, 1, 1]} : vector<2x24x32xf32> to vector<2x16x8xf32>
    %8 = tpu.concatenate %5, %6, %7 in 2 : vector<2x16x8xf32>, vector<2x16x8xf32>, vector<2x16x8xf32> -> vector<2x16x24xf32>
    %9 = vector.shape_cast %8 : vector<2x16x24xf32> to vector<32x24xf32>
    %10 = arith.truncf %9 : vector<32x24xf32> to vector<32x24xbf16>
    %c0_10 = arith.constant 0 : index
    %c0_11 = arith.constant 0 : index
    %11 = vector.load %arg2[%c0_10, %c0_11] : memref<24x16xbf16, #tpu.memory_space<vmem>>, vector<24x16xbf16>
    %cst_12 = arith.constant dense<0.000000e+00> : vector<32x16xf32>
    %12 = tpu.matmul %10, %11, %cst_12 {dimension_numbers = #tpu.dot_dimension_numbers<[1], [0], [0], [1], [0, 0, 1, 1], [], []>} : vector<32x24xbf16>, vector<24x16xbf16>, vector<32x16xf32> -> vector<32x16xf32>
    %c0_13 = arith.constant 0 : index
    %c0_14 = arith.constant 0 : index
    %13 = vector.load %arg3[%c0_13, %c0_14] : memref<1x16xf32, #tpu.memory_space<vmem>>, vector<1x16xf32>
    %14 = vector.broadcast %13 : vector<1x16xf32> to vector<32x16xf32>
    %15 = arith.addf %12, %14 : vector<32x16xf32>
    %16 = vector.shape_cast %15 : vector<32x16xf32> to vector<2x16x16xf32>
    %cst_15 = arith.constant 0.000000e+00 : f32
    %17 = vector.broadcast %cst_15 : f32 to vector<2x16x16xf32>
    %18 = arith.maximumf %16, %17 : vector<2x16x16xf32>
    %c0_16 = arith.constant 0 : index
    %c8_17 = arith.constant 8 : index
    %c0_18 = arith.constant 0 : index
    %19 = vector.load %arg17[%c0_16, %c8_17, %c0_18] : memref<2x24x32xf32, #tpu.memory_space<vmem>>, vector<2x16x16xf32>
    tpu.vector_store %arg17[%c0_16, %c8_17, %c0_18], %18 {strides = array<i32>} : memref<2x24x32xf32, #tpu.memory_space<vmem>>, vector<2x16x16xf32>,
    %c0_19 = arith.constant 0 : index
    %c0_20 = arith.constant 0 : index
    %c0_21 = arith.constant 0 : index
    %20 = vector.load %arg17[%c0_19, %c0_20, %c0_21] : memref<2x24x32xf32, #tpu.memory_space<vmem>>, vector<2x24x32xf32>
    %21 = vector.extract_strided_slice %20 {offsets = [0, 6, 0], sizes = [2, 16, 16], strides = [1, 1, 1]} : vector<2x24x32xf32> to vector<2x16x16xf32>
    %22 = vector.extract_strided_slice %20 {offsets = [0, 7, 0], sizes = [2, 16, 16], strides = [1, 1, 1]} : vector<2x24x32xf32> to vector<2x16x16xf32>
    %23 = vector.extract_strided_slice %20 {offsets = [0, 8, 0], sizes = [2, 16, 16], strides = [1, 1, 1]} : vector<2x24x32xf32> to vector<2x16x16xf32>
    %24 = tpu.concatenate %21, %22, %23 in 2 : vector<2x16x16xf32>, vector<2x16x16xf32>, vector<2x16x16xf32> -> vector<2x16x48xf32>
    %25 = vector.shape_cast %24 : vector<2x16x48xf32> to vector<32x48xf32>
    %26 = arith.truncf %25 : vector<32x48xf32> to vector<32x48xbf16>
    %c0_22 = arith.constant 0 : index
    %c0_23 = arith.constant 0 : index
    %27 = vector.load %arg4[%c0_22, %c0_23] : memref<48x16xbf16, #tpu.memory_space<vmem>>, vector<48x16xbf16>
    %cst_24 = arith.constant dense<0.000000e+00> : vector<32x16xf32>
    %28 = tpu.matmul %26, %27, %cst_24 {dimension_numbers = #tpu.dot_dimension_numbers<[1], [0], [0], [1], [0, 0, 1, 1], [], []>} : vector<32x48xbf16>, vector<48x16xbf16>, vector<32x16xf32> -> vector<32x16xf32>
    %c0_25 = arith.constant 0 : index
    %c0_26 = arith.constant 0 : index
    %29 = vector.load %arg5[%c0_25, %c0_26] : memref<1x16xf32, #tpu.memory_space<vmem>>, vector<1x16xf32>
    %30 = vector.broadcast %29 : vector<1x16xf32> to vector<32x16xf32>
    %31 = arith.addf %28, %30 : vector<32x16xf32>
    %32 = vector.shape_cast %31 : vector<32x16xf32> to vector<2x16x16xf32>
    %cst_27 = arith.constant 0.000000e+00 : f32
    %33 = vector.broadcast %cst_27 : f32 to vector<2x16x16xf32>
    %34 = arith.maximumf %32, %33 : vector<2x16x16xf32>
    %35 = vector.shape_cast %2 : vector<2x16x8xf32> to vector<32x8xf32>
    %36 = arith.truncf %35 : vector<32x8xf32> to vector<32x8xbf16>
    %c0_28 = arith.constant 0 : index
    %c0_29 = arith.constant 0 : index
    %37 = vector.load %arg6[%c0_28, %c0_29] : memref<8x16xbf16, #tpu.memory_space<vmem>>, vector<8x16xbf16>
    %cst_30 = arith.constant dense<0.000000e+00> : vector<32x16xf32>
    %38 = tpu.matmul %36, %37, %cst_30 {dimension_numbers = #tpu.dot_dimension_numbers<[1], [0], [0], [1], [0, 0, 1, 1], [], []>} : vector<32x8xbf16>, vector<8x16xbf16>, vector<32x16xf32> -> vector<32x16xf32>
    %c0_31 = arith.constant 0 : index
    %c0_32 = arith.constant 0 : index
    %39 = vector.load %arg7[%c0_31, %c0_32] : memref<1x16xf32, #tpu.memory_space<vmem>>, vector<1x16xf32>
    %40 = vector.broadcast %39 : vector<1x16xf32> to vector<32x16xf32>
    %41 = arith.addf %38, %40 : vector<32x16xf32>
    %42 = vector.shape_cast %41 : vector<32x16xf32> to vector<2x16x16xf32>
    %43 = arith.addf %34, %42 : vector<2x16x16xf32>
    %cst_33 = arith.constant 0.000000e+00 : f32
    %44 = vector.broadcast %cst_33 : f32 to vector<2x16x16xf32>
    %45 = arith.maximumf %43, %44 : vector<2x16x16xf32>
    %c0_34 = arith.constant 0 : index
    %c8_35 = arith.constant 8 : index
    %c0_36 = arith.constant 0 : index
    %46 = vector.load %arg17[%c0_34, %c8_35, %c0_36] : memref<2x24x32xf32, #tpu.memory_space<vmem>>, vector<2x16x16xf32>
    tpu.vector_store %arg17[%c0_34, %c8_35, %c0_36], %45 {strides = array<i32>} : memref<2x24x32xf32, #tpu.memory_space<vmem>>, vector<2x16x16xf32>,
    %c0_37 = arith.constant 0 : index
    %c0_38 = arith.constant 0 : index
    %c0_39 = arith.constant 0 : index
    %47 = vector.load %arg17[%c0_37, %c0_38, %c0_39] : memref<2x24x32xf32, #tpu.memory_space<vmem>>, vector<2x24x32xf32>
    %48 = vector.extract_strided_slice %47 {offsets = [0, 4, 0], sizes = [2, 16, 16], strides = [1, 1, 1]} : vector<2x24x32xf32> to vector<2x16x16xf32>
    %49 = vector.extract_strided_slice %47 {offsets = [0, 6, 0], sizes = [2, 16, 16], strides = [1, 1, 1]} : vector<2x24x32xf32> to vector<2x16x16xf32>
    %50 = vector.extract_strided_slice %47 {offsets = [0, 8, 0], sizes = [2, 16, 16], strides = [1, 1, 1]} : vector<2x24x32xf32> to vector<2x16x16xf32>
    %51 = tpu.concatenate %48, %49, %50 in 2 : vector<2x16x16xf32>, vector<2x16x16xf32>, vector<2x16x16xf32> -> vector<2x16x48xf32>
    %52 = vector.shape_cast %51 : vector<2x16x48xf32> to vector<32x48xf32>
    %53 = arith.truncf %52 : vector<32x48xf32> to vector<32x48xbf16>
    %c0_40 = arith.constant 0 : index
    %c0_41 = arith.constant 0 : index
    %54 = vector.load %arg8[%c0_40, %c0_41] : memref<48x32xbf16, #tpu.memory_space<vmem>>, vector<48x32xbf16>
    %cst_42 = arith.constant dense<0.000000e+00> : vector<32x32xf32>
    %55 = tpu.matmul %53, %54, %cst_42 {dimension_numbers = #tpu.dot_dimension_numbers<[1], [0], [0], [1], [0, 0, 1, 1], [], []>} : vector<32x48xbf16>, vector<48x32xbf16>, vector<32x32xf32> -> vector<32x32xf32>
    %c0_43 = arith.constant 0 : index
    %c0_44 = arith.constant 0 : index
    %56 = vector.load %arg9[%c0_43, %c0_44] : memref<1x32xf32, #tpu.memory_space<vmem>>, vector<1x32xf32>
    %57 = vector.broadcast %56 : vector<1x32xf32> to vector<32x32xf32>
    %58 = arith.addf %55, %57 : vector<32x32xf32>
    %59 = vector.shape_cast %58 : vector<32x32xf32> to vector<2x16x32xf32>
    %cst_45 = arith.constant 0.000000e+00 : f32
    %60 = vector.broadcast %cst_45 : f32 to vector<2x16x32xf32>
    %61 = arith.maximumf %59, %60 : vector<2x16x32xf32>
    %c0_46 = arith.constant 0 : index
    %c8_47 = arith.constant 8 : index
    %c0_48 = arith.constant 0 : index
    %62 = vector.load %arg17[%c0_46, %c8_47, %c0_48] : memref<2x24x32xf32, #tpu.memory_space<vmem>>, vector<2x16x32xf32>
    tpu.vector_store %arg17[%c0_46, %c8_47, %c0_48], %61 {strides = array<i32>} : memref<2x24x32xf32, #tpu.memory_space<vmem>>, vector<2x16x32xf32>,
    %c0_49 = arith.constant 0 : index
    %c0_50 = arith.constant 0 : index
    %c0_51 = arith.constant 0 : index
    %63 = vector.load %arg17[%c0_49, %c0_50, %c0_51] : memref<2x24x32xf32, #tpu.memory_space<vmem>>, vector<2x24x32xf32>
    %64 = vector.extract_strided_slice %63 {offsets = [0, 4, 0], sizes = [2, 16, 32], strides = [1, 1, 1]} : vector<2x24x32xf32> to vector<2x16x32xf32>
    %65 = vector.extract_strided_slice %63 {offsets = [0, 6, 0], sizes = [2, 16, 32], strides = [1, 1, 1]} : vector<2x24x32xf32> to vector<2x16x32xf32>
    %66 = vector.extract_strided_slice %63 {offsets = [0, 8, 0], sizes = [2, 16, 32], strides = [1, 1, 1]} : vector<2x24x32xf32> to vector<2x16x32xf32>
    %67 = tpu.concatenate %64, %65, %66 in 2 : vector<2x16x32xf32>, vector<2x16x32xf32>, vector<2x16x32xf32> -> vector<2x16x96xf32>
    %68 = vector.shape_cast %67 : vector<2x16x96xf32> to vector<32x96xf32>
    %69 = arith.truncf %68 : vector<32x96xf32> to vector<32x96xbf16>
    %c0_52 = arith.constant 0 : index
    %c0_53 = arith.constant 0 : index
    %70 = vector.load %arg10[%c0_52, %c0_53] : memref<96x32xbf16, #tpu.memory_space<vmem>>, vector<96x32xbf16>
    %cst_54 = arith.constant dense<0.000000e+00> : vector<32x32xf32>
    %71 = tpu.matmul %69, %70, %cst_54 {dimension_numbers = #tpu.dot_dimension_numbers<[1], [0], [0], [1], [0, 0, 1, 1], [], []>} : vector<32x96xbf16>, vector<96x32xbf16>, vector<32x32xf32> -> vector<32x32xf32>
    %c0_55 = arith.constant 0 : index
    %c0_56 = arith.constant 0 : index
    %72 = vector.load %arg11[%c0_55, %c0_56] : memref<1x32xf32, #tpu.memory_space<vmem>>, vector<1x32xf32>
    %73 = vector.broadcast %72 : vector<1x32xf32> to vector<32x32xf32>
    %74 = arith.addf %71, %73 : vector<32x32xf32>
    %75 = vector.shape_cast %74 : vector<32x32xf32> to vector<2x16x32xf32>
    %cst_57 = arith.constant 0.000000e+00 : f32
    %76 = vector.broadcast %cst_57 : f32 to vector<2x16x32xf32>
    %77 = arith.maximumf %75, %76 : vector<2x16x32xf32>
    %78 = vector.shape_cast %45 : vector<2x16x16xf32> to vector<32x16xf32>
    %79 = arith.truncf %78 : vector<32x16xf32> to vector<32x16xbf16>
    %c0_58 = arith.constant 0 : index
    %c0_59 = arith.constant 0 : index
    %80 = vector.load %arg12[%c0_58, %c0_59] : memref<16x32xbf16, #tpu.memory_space<vmem>>, vector<16x32xbf16>
    %cst_60 = arith.constant dense<0.000000e+00> : vector<32x32xf32>
    %81 = tpu.matmul %79, %80, %cst_60 {dimension_numbers = #tpu.dot_dimension_numbers<[1], [0], [0], [1], [0, 0, 1, 1], [], []>} : vector<32x16xbf16>, vector<16x32xbf16>, vector<32x32xf32> -> vector<32x32xf32>
    %c0_61 = arith.constant 0 : index
    %c0_62 = arith.constant 0 : index
    %82 = vector.load %arg13[%c0_61, %c0_62] : memref<1x32xf32, #tpu.memory_space<vmem>>, vector<1x32xf32>
    %83 = vector.broadcast %82 : vector<1x32xf32> to vector<32x32xf32>
    %84 = arith.addf %81, %83 : vector<32x32xf32>
    %85 = vector.shape_cast %84 : vector<32x32xf32> to vector<2x16x32xf32>
    %86 = arith.addf %77, %85 : vector<2x16x32xf32>
    %cst_63 = arith.constant 0.000000e+00 : f32
    %87 = vector.broadcast %cst_63 : f32 to vector<2x16x32xf32>
    %88 = arith.maximumf %86, %87 : vector<2x16x32xf32>
    %cst_64 = arith.constant dense<0.000000e+00> : vector<2x32xf32>
    %89 = vector.multi_reduction <add>, %88, %cst_64 [1] : vector<2x16x32xf32> to vector<2x32xf32>
    %c0_65 = arith.constant 0 : index
    %c0_66 = arith.constant 0 : index
    %90 = vector.load %arg14[%c0_65, %c0_66] : memref<32x64xf32, #tpu.memory_space<vmem>>, vector<32x64xf32>
    %cst_67 = arith.constant dense<0.000000e+00> : vector<2x64xf32>
    %91 = tpu.matmul %89, %90, %cst_67 {dimension_numbers = #tpu.dot_dimension_numbers<[1], [0], [0], [1], [0, 0, 1, 1], [], []>} : vector<2x32xf32>, vector<32x64xf32>, vector<2x64xf32> -> vector<2x64xf32>
    %c0_68 = arith.constant 0 : index
    %c0_69 = arith.constant 0 : index
    %92 = vector.load %arg15[%c0_68, %c0_69] : memref<1x64xf32, #tpu.memory_space<vmem>>, vector<1x64xf32>
    %93 = vector.broadcast %92 : vector<1x64xf32> to vector<2x64xf32>
    %94 = arith.addf %91, %93 : vector<2x64xf32>
    %95 = vector.shape_cast %94 : vector<2x64xf32> to vector<1x2x64xf32>
    %c0_70 = arith.constant 0 : index
    %c0_71 = arith.constant 0 : index
    %c0_72 = arith.constant 0 : index
    %96 = vector.load %arg16[%c0_70, %c0_71, %c0_72] : memref<1x2x64xf32, #tpu.memory_space<vmem>>, vector<1x2x64xf32>
    tpu.vector_store %arg16[%c0_70, %c0_71, %c0_72], %95 {strides = array<i32>} : memref<1x2x64xf32, #tpu.memory_space<vmem>>, vector<1x2x64xf32>,
    return
  }
  func.func @transform_0(%arg0: i32) -> (i32, i32, i32) {
    %c0_i32 = arith.constant 0 : i32
    %c0_i32_0 = arith.constant 0 : i32
    %c0_i32_1 = arith.constant 0 : i32
    return %arg0, %c0_i32, %c0_i32_0 : i32, i32, i32
  }
  func.func @transform_1(%arg0: i32) -> (i32, i32) {
    %c0_i32 = arith.constant 0 : i32
    %c0_i32_0 = arith.constant 0 : i32
    %c0_i32_1 = arith.constant 0 : i32
    return %c0_i32, %c0_i32_0 : i32, i32
  }
  func.func @transform_2(%arg0: i32) -> (i32, i32) {
    %c0_i32 = arith.constant 0 : i32
    %c0_i32_0 = arith.constant 0 : i32
    %c0_i32_1 = arith.constant 0 : i32
    return %c0_i32, %c0_i32_0 : i32, i32
  }
  func.func @transform_3(%arg0: i32) -> (i32, i32) {
    %c0_i32 = arith.constant 0 : i32
    %c0_i32_0 = arith.constant 0 : i32
    %c0_i32_1 = arith.constant 0 : i32
    return %c0_i32, %c0_i32_0 : i32, i32
  }
  func.func @transform_4(%arg0: i32) -> (i32, i32) {
    %c0_i32 = arith.constant 0 : i32
    %c0_i32_0 = arith.constant 0 : i32
    %c0_i32_1 = arith.constant 0 : i32
    return %c0_i32, %c0_i32_0 : i32, i32
  }
  func.func @transform_5(%arg0: i32) -> (i32, i32) {
    %c0_i32 = arith.constant 0 : i32
    %c0_i32_0 = arith.constant 0 : i32
    %c0_i32_1 = arith.constant 0 : i32
    return %c0_i32, %c0_i32_0 : i32, i32
  }
  func.func @transform_6(%arg0: i32) -> (i32, i32) {
    %c0_i32 = arith.constant 0 : i32
    %c0_i32_0 = arith.constant 0 : i32
    %c0_i32_1 = arith.constant 0 : i32
    return %c0_i32, %c0_i32_0 : i32, i32
  }
  func.func @transform_7(%arg0: i32) -> (i32, i32) {
    %c0_i32 = arith.constant 0 : i32
    %c0_i32_0 = arith.constant 0 : i32
    %c0_i32_1 = arith.constant 0 : i32
    return %c0_i32, %c0_i32_0 : i32, i32
  }
  func.func @transform_8(%arg0: i32) -> (i32, i32) {
    %c0_i32 = arith.constant 0 : i32
    %c0_i32_0 = arith.constant 0 : i32
    %c0_i32_1 = arith.constant 0 : i32
    return %c0_i32, %c0_i32_0 : i32, i32
  }
  func.func @transform_9(%arg0: i32) -> (i32, i32) {
    %c0_i32 = arith.constant 0 : i32
    %c0_i32_0 = arith.constant 0 : i32
    %c0_i32_1 = arith.constant 0 : i32
    return %c0_i32, %c0_i32_0 : i32, i32
  }
  func.func @transform_10(%arg0: i32) -> (i32, i32) {
    %c0_i32 = arith.constant 0 : i32
    %c0_i32_0 = arith.constant 0 : i32
    %c0_i32_1 = arith.constant 0 : i32
    return %c0_i32, %c0_i32_0 : i32, i32
  }
  func.func @transform_11(%arg0: i32) -> (i32, i32) {
    %c0_i32 = arith.constant 0 : i32
    %c0_i32_0 = arith.constant 0 : i32
    %c0_i32_1 = arith.constant 0 : i32
    return %c0_i32, %c0_i32_0 : i32, i32
  }
  func.func @transform_12(%arg0: i32) -> (i32, i32) {
    %c0_i32 = arith.constant 0 : i32
    %c0_i32_0 = arith.constant 0 : i32
    %c0_i32_1 = arith.constant 0 : i32
    return %c0_i32, %c0_i32_0 : i32, i32
  }
  func.func @transform_13(%arg0: i32) -> (i32, i32) {
    %c0_i32 = arith.constant 0 : i32
    %c0_i32_0 = arith.constant 0 : i32
    %c0_i32_1 = arith.constant 0 : i32
    return %c0_i32, %c0_i32_0 : i32, i32
  }
  func.func @transform_14(%arg0: i32) -> (i32, i32) {
    %c0_i32 = arith.constant 0 : i32
    %c0_i32_0 = arith.constant 0 : i32
    %c0_i32_1 = arith.constant 0 : i32
    return %c0_i32, %c0_i32_0 : i32, i32
  }
  func.func @transform_15(%arg0: i32) -> (i32, i32, i32) {
    %c0_i32 = arith.constant 0 : i32
    %c0_i32_0 = arith.constant 0 : i32
    %c0_i32_1 = arith.constant 0 : i32
    return %arg0, %c0_i32, %c0_i32_0 : i32, i32, i32
  }
}

</mosaic_0001>

<bundles_post_ra>
// kernel: tpu_custom_call.1
= control target key start
LH: loop header
LB: loop body
LE: loop exit
PB: predicated region body
PF: predicated region fallthrough
CT: control target
= control target key end

     0   :  { %s2539_s0 = inlined_call_operand.vmem [shape: f32[4,16,8], index: 0, kind: input, shape index: {}]   ;;  %s2540_s1 = inlined_call_operand.vmem [shape: bf16[24,16], index: 1, kind: input, shape index: {}]   ;;  %s2541_s2 = inlined_call_operand.vmem [shape: f32[1,16], index: 2, kind: input, shape index: {}]   ;;  %s2542_s3 = inlined_call_operand.vmem [shape: bf16[48,16], index: 3, kind: input, shape index: {}]   ;;  %s2543_s4 = inlined_call_operand.vmem [shape: f32[1,16], index: 4, kind: input, shape index: {}]   ;;  %s2544_s5 = inlined_call_operand.vmem [shape: bf16[8,16], index: 5, kind: input, shape index: {}]   ;;  %s2545_s6 = inlined_call_operand.vmem [shape: f32[1,16], index: 6, kind: input, shape index: {}]   ;;  %s2546_s7 = inlined_call_operand.vmem [shape: bf16[48,32], index: 7, kind: input, shape index: {}]   ;;  %s2547_s8 = inlined_call_operand.vmem [shape: f32[1,32], index: 8, kind: input, shape index: {}]   ;;  %s2548_s9 = inlined_call_operand.vmem [shape: bf16[96,32], index: 9, kind: input, shape index: {}]   ;;  %s2549_s10 = inlined_call_operand.vmem [shape: f32[1,32], index: 10, kind: input, shape index: {}]   ;;  %s2550_s11 = inlined_call_operand.vmem [shape: bf16[16,32], index: 11, kind: input, shape index: {}]   ;;  %s2551_s12 = inlined_call_operand.vmem [shape: f32[1,32], index: 12, kind: input, shape index: {}]   ;;  %s2552_s13 = inlined_call_operand.vmem [shape: f32[32,64], index: 13, kind: input, shape index: {}]   ;;  %s2553_s14 = inlined_call_operand.vmem [shape: f32[1,64], index: 14, kind: input, shape index: {}]   ;;  %s2554_s15 = inlined_call_operand.hbm [shape: f32[2,2,64], index: 15, kind: output, shape index: {}]  }
   0x1   :  { %2557 = sst [smem:[#allocation6_spill]] %s2539_s0 }
   0x2   :  { %2558 = sst [smem:[#allocation7_spill]] %s2540_s1 }
   0x3   :  { %2559 = sst [smem:[#allocation8_spill]] %s2541_s2 }
   0x4   :  { %2560 = sst [smem:[#allocation9_spill]] %s2542_s3 }
   0x5   :  { %2561 = sst [smem:[#allocation10_spill]] %s2543_s4 }
   0x6   :  { %20 = vsyncpa [#allocation4], 0 }
   0x7   :  { %22 = vsyncpa [#allocation4 + $0x1], 0  ;;  %s2124_s18 = smov 0   ;;  %s2126_s19 = smov 0  }
   0x8   :  { %s2128_s20 = smov 0   ;;  %s2130_s21 = smov 0  }
   0x9 LB: > { %s2145_s22 = sadd.s32 4294967295, %s2034_s21   ;;  %s1635_s23 = sadd.s32 4294967294, %s2034_s21   ;;  %s2034_s21 = sphi %s2130_s21, %s2573_s21   ;;  %s2030_s20 = sphi %s2128_s20, %s2572_s20   ;;  %s2026_s19 = sphi %s2126_s19, %s2571_s19   ;;  %s2022_s18 = sphi %s2124_s18, %s2570_s18  }
   0xa   : > { %s2149_s24 = sadd.s32 1, %s2034_s21   ;;  %s355_s25 = sadd.s32 1, %s2030_s20 }
   0xb   : > { %s352_s26 = ssub.s32 %s2034_s21, %s2149_s24  ;;  %p365_p0 = scmp.ne.s32.totalorder %s2030_s20, %s2026_s19 }
   0xc   : > { %p353_p1 = scmp.eq.s32.totalorder %s352_s26, 0  ;;  %p366_p2 = scmp.eq.s32.totalorder %s2145_s22, 1 }
   0xd   : > { %p371_p3 = scmp.ne.s32.totalorder %s2026_s19, %s2022_s18  ;;  %p372_p4 = scmp.eq.s32.totalorder %s1635_s23, 1 }
   0xe   : > { %s2160_s27 = scalar_select %p353_p1, %s2030_s20, %s355_s25  }
   0xf   : > { %p2162_p5 = por %p366_p2, %p365_p0  ;;  %p2166_p6 = por %p372_p4, %p371_p3 }
  0x10   : > { %p1638_p7 = scmp.ge.s32.totalorder %s2034_s21, 1  ;;  %p442_p8 = scmp.lt.s32.totalorder %s2034_s21, 3 }
  0x12   : > { %p443_p9 = pnand %p1638_p7, %p442_p8 }
  0x13   : > { %s1640_s30 = sshll.u32 (!%p443_p9), %s2145_s22, 1  ;;  %vm499_vm0 = vcmask (!%p443_p9), 261120   ;;  %v2036_v0 = vmov (!%p443_p9), 0.0   ;;  %vm506_vm1 = vcmask (!%p443_p9), 64512   ;;  %s2564_s0 = sld [smem:[#allocation6_spill]] (!%p443_p9)  ;;  %vm523_vm2 = vcmask (!%p443_p9), 1046528  }
  0x14   : > { %446 = sbr.rel (%p443_p9) target bundleno = 1737 (0x6c9), region = 80  ;;  %p492_p10 = scmp.lt.s32.totalorder (!%p443_p9), %s1640_s30, 3  ;;  %500 = vst.msk [vmem:[#allocation2] sm:$0xff] (!%p443_p9), %vm499_vm0, %v2036_v0  ;;  %501 = vst.msk [vmem:[#allocation2 + $0x18] sm:$0xff] (!%p443_p9), %vm499_vm0, %v2036_v0  ;;  %vm552_vm3 = vcmask (!%p443_p9), 1045504   ;;  %vm639_vm4 = vcmask (!%p443_p9), 1043456  }
  0x15   : > { %s2565_s1 = sld [smem:[#allocation7_spill]] (!%p443_p9)  ;;  %s2037_s23 = smov (!%p443_p9), 8   ;;  %vm583_vm5 = vcmask (!%p443_p9), 130048   ;;  %vm596_vm6 = vcmask (!%p443_p9), 1041408   ;;  %vm632_vm7 = vcmask (!%p443_p9), 195584   ;;  %vm829_vm8 = vcmask (!%p443_p9), 392192  }
  0x16   : > { %s2566_s2 = sld [smem:[#allocation8_spill]] (!%p443_p9)  ;;  %s2567_s3 = sld [smem:[#allocation9_spill]] (!%p443_p9)  ;;  %vm1231_vm9 = vcmask (!%p443_p9), 523264   ;;  %vm1315_vm10 = vcmask (!%p443_p9), 785408   ;;  %vm2042_vm11 = vmmov (!%p443_p9), 0   ;;  %vm1486_vm12 = vcmask (!%p443_p9), 1041409  }
  0x17   : > { %s2555_s26 = smov (!%p443_p9), 32   ;;  %s2568_s4 = sld [smem:[#allocation10_spill]] (!%p443_p9)  ;;  %vm1560_vm13 = vcmask (!%p443_p9), 517120  }
  0x18   : > { %s1679_s17 = sshll.u32 (!%p443_p9), %s2145_s22, 5  ;;  %s2043_s22 = smov (!%p443_p9), [#allocation3]  }
  0x1b   : > { %s2575_s30 = smov (!%p492_p10, %s1640_s30), 3  ;;  %v2196_v5 = vld [vmem:[#allocation2] sm:$0xff]  ;;  %v2198_v6 = vld [vmem:[#allocation2 + $0x18] sm:$0xff]  ;;  %v1958_v29 = vld [vmem:[%s2565_s1 + $0x8] ss:$0 sps:$4 sm:$0xff]  }
  0x1c   : > { %s1682_s16 = sshll.u32 %s2575_s30, 4  ;;  %v524_v7 = vrot.slane %v2196_v5, 1  ;;  %v529_v11 = vrot.slane %v2198_v6, 1  ;;  %v1957_v17 = vld [vmem:[%s2565_s1] sm:$0xff]   ;;  %v641_v33 = vsel %vm639_vm4, %v1958_v29, 0  ;;  %s2569_s30 = smov 32  }
  0x1d   : > { %s496_s25 = scalar_lea.vmem %s2564_s0, %s1682_s16  ;;  %1716 = vmatprep.subr.bf16.mxu0 %v1957_v17  ;;  %s2040_s16 = smov 64  }
  0x1e   : > { %v2180_v1 = vld [vmem:[%s496_s25 + $0x10] sm:$0xff]  ;;  %v2182_v2 = vld [vmem:[%s496_s25 + $0x18] sm:$0xff]  ;;  %v2184_v3 = vld [vmem:[%s496_s25] sm:$0xff]  ;;  %1717 = vmatpush3.bf16.msra.mxu0 %v1957_v17  ;;  %s488_s0 = sand.u32 1, %s2026_s19  }
  0x1f   : > { %509 = vst.msk [vmem:[#allocation2 + $0x20] sm:$0xff] %vm506_vm1, %v2180_v1  ;;  %510 = vst.msk [vmem:[#allocation2 + $0x28] sm:$0xff] %vm506_vm1, %v2182_v2  ;;  %v2190_v4 = vld [vmem:[%s496_s25 + $0x8] sm:$0xff]  ;;  %1789 = vmatprep.subr.msk.bf16.mxu0 %vm639_vm4, %v1958_v29  ;;  %s2038_s25 = smov 16   ;;  %s1639_s1 = sshll.u32 %s488_s0, 1 }
  0x20   : > { %507 = vst.msk [vmem:[#allocation2 + $0x8] sm:$0xff] %vm506_vm1, %v2184_v3  ;;  %508 = vst.msk [vmem:[#allocation2 + $0x10] sm:$0xff] %vm506_vm1, %v2190_v4 }
  0x22   : > { %1719 = vmatpush3.bf16.msra.mxu0 %v641_v33 }
  0x26   : > { %v2201_v8 = vld [vmem:[#allocation2 + $0x20] sm:$0xff]  ;;  %v516_v9 = vld [vmem:[#allocation2 + $0x28] sm:$0xff] }
  0x27   : > { %v512_v10 = vld [vmem:[#allocation2 + $0x8] sm:$0xff]  ;;  %v530_v12 = vrot.slane %v2201_v8, 1  ;;  %v532_v13 = vrot.slane %v516_v9, 1  ;;  %v2205_v14 = vld [vmem:[#allocation2 + $0x10] sm:$0xff]  ;;  %v556_v22 = vrot.slane %v2201_v8, 2  ;;  %v557_v23 = vrot.slane %v516_v9, 2 }
  0x28   : > { %v525_v15 = vrot.slane %v512_v10, 1  ;;  %v553_v16 = vrot.slane %v512_v10, 2  ;;  %v527_v18 = vrot.slane %v2205_v14, 1  ;;  %v554_v19 = vrot.slane %v2205_v14, 2 }
  0x29   : > { %v533_v20 = vsel %vm523_vm2, %v530_v12, %v532_v13  ;;  %v531_v27 = vsel %vm523_vm2, %v529_v11, %v530_v12  ;;  %v558_v32 = vsel %vm552_vm3, %v556_v22, %v557_v23 }
  0x2a   : > { %v526_v21 = vsel %vm523_vm2, %v524_v7, %v525_v15  ;;  %v1852_v24 = vpack.i.bf16 %v532_v13, %v533_v20  ;;  %v528_v25 = vsel %vm523_vm2, %v525_v15, %v527_v18  ;;  %v555_v26 = vsel %vm552_vm3, %v553_v16, %v554_v19 }
  0x2b   : > { %v1837_v28 = vpack.i.bf16 %v528_v25, %v526_v21  ;;  %v1857_v30 = vpack.i.bf16 %v555_v26, %v553_v16  ;;  %v1842_v31 = vpack.i.bf16 %v531_v27, %v527_v18  ;;  %v1862_v34 = vpack.i.bf16 %v557_v23, %v558_v32  ;;  %v1643_v23 = vld [vmem:[%s2566_s2] ss:$0 sm:$0xff] }
  0x2c   : > { %1853 = vrot.lane.b32.xlu1 %v1852_v24, %s2037_s23  ;;  %v1847_v35 = vpack.i.bf16 %v556_v22, %v554_v19 }
  0x2d   : > { %1838 = vrot.lane.b32.xlu0 %v1837_v28, %s2037_s23 }
  0x30   : > { %1858 = vrot.lane.b32.xlu1 %v1857_v30, %s2038_s25 }
  0x31   : > { %1843 = vrot.lane.b32.xlu0 %v1842_v31, %s2037_s23  ;;  %s490_s23 = scalar_lea.vmem [#allocation3], %s1639_s1  ;;  %s1976_s1 = sshll.u32 %s2043_s22, 4  ;;  %s1977_s1 = int_to_ptr.vmem [resolvable:$false] %s1976_s1 }
  0x34   : > { %1863 = vrot.lane.b32.xlu1 %v1862_v34, %s2038_s25 }
  0x35   : > { %1848 = vrot.lane.b32.xlu0 %v1847_v35, %s2038_s25 }
  0x9e   : > { %v1854_v36 = vpop.permute.xlu1 %1853 }
  0x9f   : > { %v1839_v37 = vpop.permute.xlu0 %1838  ;;  %v1856_v41 = vunpack.i.h.bf16 %v1854_v36  ;;  %v1855_v42 = vunpack.i.l.bf16 %v1854_v36  ;;  %v1959_v36 = vld [vmem:[%s2567_s3] sm:$0xff]  }
  0xa0   : > { %v1841_v38 = vunpack.i.h.bf16 %v1839_v37  ;;  %v1840_v39 = vunpack.i.l.bf16 %v1839_v37  ;;  %1724 = vmatprep.subr.bf16.mxu1 %v1959_v36 }
  0xa1   : > { %v582_v53 = vsel %vm506_vm1, %v516_v9, %v1856_v41  ;;  %v581_v54 = vsel %vm506_vm1, %v2201_v8, %v1855_v42  ;;  %1725 = vmatpush3.bf16.msra.mxu1 %v1959_v36 }
  0xa2   : > { %v1859_v40 = vpop.permute.xlu1 %1858  ;;  %v578_v46 = vsel %vm506_vm1, %v512_v10, %v1841_v38  ;;  %v577_v47 = vsel %vm506_vm1, %v2196_v5, %v1840_v39 }
  0xa3   : > { %v1861_v43 = vunpack.i.h.bf16 %v1859_v40  ;;  %v1860_v44 = vunpack.i.l.bf16 %v1859_v40  ;;  %v1844_v45 = vpop.permute.xlu0 %1843 }
  0xa4   : > { %v1846_v50 = vunpack.i.h.bf16 %v1844_v45  ;;  %v1845_v51 = vunpack.i.l.bf16 %v1844_v45 }
  0xa5   : > { %v584_v48 = vsel %vm583_vm5, %v577_v47, %v1860_v44  ;;  %v585_v49 = vsel %vm583_vm5, %v578_v46, %v1861_v43  ;;  %v1960_v43 = vld [vmem:[%s2567_s3 + $0x8] sm:$0xff]  }
  0xa6   : > { %v1864_v52 = vpop.permute.xlu1 %1863  ;;  %v597_v58 = vrot.slane %v584_v48, 6  ;;  %v598_v59 = vrot.slane %v585_v49, 6  ;;  %v580_v62 = vsel %vm506_vm1, %v2198_v6, %v1846_v50  ;;  %v579_v63 = vsel %vm506_vm1, %v2205_v14, %v1845_v51  ;;  %1726 = vmatprep.subr.bf16.mxu1 %v1960_v43 }
  0xa7   : > { %v1866_v55 = vunpack.i.h.bf16 %v1864_v52  ;;  %v1865_v56 = vunpack.i.l.bf16 %v1864_v52  ;;  %v1849_v57 = vpop.permute.xlu0 %1848  ;;  %1727 = vmatpush3.bf16.msra.mxu1 %v1960_v43  ;;  %v891_v52 = vld [vmem:[%s2544_s5] sm:$0xf] }
  0xa8   : > { %v1851_v60 = vunpack.i.h.bf16 %v1849_v57  ;;  %v1850_v61 = vunpack.i.l.bf16 %v1849_v57  ;;  %v599_v19 = vsel %vm596_vm6, %v597_v58, %v598_v59  ;;  %1790 = vmatprep.subr.msk.bf16.mxu0 %vm639_vm4, %v891_v52  ;;  %v889_v57 = vpack.c.bf16 %v2190_v4, %v2184_v3 }
  0xa9   : > { %v589_v10 = vsel %vm583_vm5, %v582_v53, %v1866_v55  ;;  %v588_v9 = vsel %vm583_vm5, %v581_v54, %v1865_v56  ;;  %v1961_v53 = vld [vmem:[%s2567_s3 + $0x10] sm:$0xff]   ;;  %s2497_s3 = scalar_lea.hbm %s2554_s15, %s1679_s17 }
  0xaa   : > { %v605_v12 = vrot.slane %v589_v10, 6  ;;  %v603_v13 = vrot.slane %v588_v9, 6  ;;  %v586_v8 = vsel %vm583_vm5, %v579_v63, %v1850_v61  ;;  %v587_v15 = vsel %vm583_vm5, %v580_v62, %v1851_v60  ;;  %1728 = vmatprep.subr.bf16.mxu1 %v1961_v53 }
  0xab   : > { %v600_v16 = vrot.slane %v586_v8, 6  ;;  %v602_v17 = vrot.slane %v587_v15, 6  ;;  %1729 = vmatpush3.bf16.msra.mxu1 %v1961_v53  ;;  %v890_v63 = vpack.c.bf16 %v2182_v2, %v2180_v1  ;;  %v1648_v53 = vld [vmem:[%s2568_s4] ss:$0 sm:$0xff]  ;;  %s1978_s4 = scalar_lea.vmem %s1977_s1, 64 }
  0xac   : > { %v606_v18 = vsel %vm596_vm6, %v603_v13, %v605_v12 }
  0xad   : > { %v601_v20 = vsel %vm596_vm6, %v598_v59, %v600_v16  ;;  %v604_v14 = vsel %vm596_vm6, %v602_v17, %v603_v13 }
  0xae   : > { %v611_v21 = vpack.c.bf16 %v601_v20, %v599_v19  ;;  %v612_v22 = vpack.c.bf16 %v606_v18, %v604_v14 }
  0xb0   : > { %1720 = vmatprep.mubr.msk.bf16.mxu0 %vm632_vm7, %v611_v21 }
  0xb1   : > { %1721 = vmatmul.mubr.msk.bf16.vlgmr.msra.gmra.mrb[0].mxu0 %vm632_vm7, %v612_v22 }
  0xb2   : > { %1736 = vmatprep.mubr.msk.bf16.mxu0 %vm506_vm1, %v889_v57 }
 0x184   : > { %v1722_v24 = vpop.f32.mrb[0].mxu0 }
 0x185   : > { %v686_v25 = vadd.f32 %v1722_v24, %v1643_v23  ;;  %v677_v26 = vpop.f32.mrb[1].mxu0 }
 0x186   : > { %v678_v27 = vadd.f32 %v1643_v23, %v677_v26  ;;  %v1723_v28 = vpop.f32.mrb[2].mxu0 }
 0x187   : > { %v694_v29 = vmax.f32 %v686_v25, 0.0  ;;  %v689_v30 = vadd.f32 %v1723_v28, %v1643_v23  ;;  %v680_v31 = vpop.f32.mrb[3].mxu0 }
 0x188   : > { %v692_v32 = vmax.f32 %v678_v27, 0.0  ;;  %v681_v33 = vadd.f32 %v1643_v23, %v680_v31 }
 0x189   : > { %698 = vst.msk [vmem:[#allocation2 + $0x20] sm:$0xff] %vm583_vm5, %v694_v29  ;;  %v695_v34 = vmax.f32 %v689_v30, 0.0 }
 0x18a   : > { %696 = vst.msk [vmem:[#allocation2 + $0x8] sm:$0xff] %vm583_vm5, %v692_v32  ;;  %v693_v35 = vmax.f32 %v681_v33, 0.0 }
 0x18b   : > { %699 = vst.msk [vmem:[#allocation2 + $0x28] sm:$0xff] %vm583_vm5, %v695_v34 }
 0x18c   : > { %697 = vst.msk [vmem:[#allocation2 + $0x10] sm:$0xff] %vm583_vm5, %v693_v35 }
 0x190   : > { %v2261_v37 = vld [vmem:[#allocation2 + $0x20] sm:$0xff] }
 0x191   : > { %v718_v38 = vrot.slane %v2261_v37, 1  ;;  %v701_v40 = vld [vmem:[#allocation2 + $0x8] sm:$0xff]  ;;  %v743_v59 = vrot.slane %v2261_v37, 2 }
 0x192   : > { %v705_v39 = vld [vmem:[#allocation2 + $0x28] sm:$0xff]  ;;  %v740_v48 = vrot.slane %v701_v40, 2  ;;  %v713_v49 = vrot.slane %v701_v40, 1 }
 0x193   : > { %v720_v41 = vrot.slane %v705_v39, 1  ;;  %v2264_v42 = vld [vmem:[#allocation2 + $0x10] sm:$0xff]  ;;  %v719_v47 = vsel %vm523_vm2, %v529_v11, %v718_v38  ;;  %v744_v56 = vrot.slane %v705_v39, 2  ;;  %v906_v11 = vsel %vm639_vm4, %v891_v52, 0  ;;  %v1654_v52 = vld [vmem:[%s2545_s6] ss:$0 sm:$0xff] }
 0x194   : > { %v715_v44 = vrot.slane %v2264_v42, 1  ;;  %v741_v45 = vrot.slane %v2264_v42, 2  ;;  %v714_v58 = vsel %vm523_vm2, %v524_v7, %v713_v49  ;;  %1735 = vmatpush3.bf16.msra.mxu0 %v906_v11 }
 0x195   : > { %v721_v46 = vsel %vm523_vm2, %v718_v38, %v720_v41  ;;  %v745_v62 = vsel %vm552_vm3, %v743_v59, %v744_v56 }
 0x196   : > { %v1872_v50 = vpack.i.bf16 %v720_v41, %v721_v46  ;;  %v1867_v51 = vpack.i.bf16 %v719_v47, %v715_v44  ;;  %v742_v54 = vsel %vm552_vm3, %v740_v48, %v741_v45  ;;  %v716_v55 = vsel %vm523_vm2, %v713_v49, %v715_v44 }
 0x197   : > { %v1887_v60 = vpack.i.bf16 %v742_v54, %v740_v48  ;;  %v1877_v61 = vpack.i.bf16 %v716_v55, %v714_v58  ;;  %1737 = vmatmul.mubr.msk.bf16.vlgmr.msra.gmra.mrb[4].mxu0 %vm506_vm1, %v890_v63  ;;  %v1892_v3 = vpack.i.bf16 %v744_v56, %v745_v62  ;;  %v1882_v4 = vpack.i.bf16 %v743_v59, %v741_v45 }
 0x198   : > { %1873 = vrot.lane.b32.xlu0 %v1872_v50, %s2038_s25  ;;  %1868 = vrot.lane.b32.xlu1 %v1867_v51, %s2038_s25 }
 0x19c   : > { %1888 = vrot.lane.b32.xlu1 %v1887_v60, %s2555_s26  ;;  %1878 = vrot.lane.b32.xlu0 %v1877_v61, %s2038_s25 }
 0x1a0   : > { %1893 = vrot.lane.b32.xlu1 %v1892_v3, %s2555_s26  ;;  %1883 = vrot.lane.b32.xlu0 %v1882_v4, %s2555_s26 }
 0x20a   : > { %v1874_v7 = vpop.permute.xlu0 %1873  ;;  %v1869_v10 = vpop.permute.xlu1 %1868 }
 0x20b   : > { %v1876_v9 = vunpack.i.h.bf16 %v1874_v7  ;;  %v1875_v12 = vunpack.i.l.bf16 %v1874_v7  ;;  %v1871_v17 = vunpack.i.h.bf16 %v1869_v10  ;;  %v1870_v18 = vunpack.i.l.bf16 %v1869_v10 }
 0x20d   : > { %v769_v14 = vsel %vm583_vm5, %v705_v39, %v1876_v9  ;;  %v768_v21 = vsel %vm583_vm5, %v2261_v37, %v1875_v12  ;;  %v767_v30 = vsel %vm583_vm5, %v2198_v6, %v1871_v17  ;;  %v766_v31 = vsel %vm583_vm5, %v2264_v42, %v1870_v18 }
 0x20e   : > { %v1889_v13 = vpop.permute.xlu1 %1888  ;;  %v1879_v8 = vpop.permute.xlu0 %1878 }
 0x20f   : > { %v1891_v1 = vunpack.i.h.bf16 %v1889_v13  ;;  %v1890_v2 = vunpack.i.l.bf16 %v1889_v13  ;;  %v1881_v15 = vunpack.i.h.bf16 %v1879_v8  ;;  %v1880_v16 = vunpack.i.l.bf16 %v1879_v8 }
 0x211   : > { %v765_v19 = vsel %vm583_vm5, %v701_v40, %v1881_v15  ;;  %v764_v20 = vsel %vm583_vm5, %v2196_v5, %v1880_v16 }
 0x212   : > { %v1894_v22 = vpop.permute.xlu1 %1893  ;;  %v1884_v23 = vpop.permute.xlu0 %1883  ;;  %v770_v24 = vsel %vm499_vm0, %v764_v20, %v1890_v2  ;;  %v771_v25 = vsel %vm499_vm0, %v765_v19, %v1891_v1 }
 0x213   : > { %v1896_v26 = vunpack.i.h.bf16 %v1894_v22  ;;  %v1895_v27 = vunpack.i.l.bf16 %v1894_v22  ;;  %v1886_v28 = vunpack.i.h.bf16 %v1884_v23  ;;  %v1885_v29 = vunpack.i.l.bf16 %v1884_v23 }
 0x214   : > { %v782_v32 = vrot.slane %v770_v24, 6  ;;  %v783_v33 = vrot.slane %v771_v25, 6  ;;  %v986_v22 = vrot.slane %v2198_v6, 2 }
 0x215   : > { %v775_v34 = vsel %vm499_vm0, %v769_v14, %v1896_v26  ;;  %v774_v35 = vsel %vm499_vm0, %v768_v21, %v1895_v27  ;;  %v773_v36 = vsel %vm499_vm0, %v767_v30, %v1886_v28  ;;  %v772_v37 = vsel %vm499_vm0, %v766_v31, %v1885_v29  ;;  %v1962_v14 = vld [vmem:[%s2546_s7] sm:$0xff]   ;;  %v1963_v30 = vld [vmem:[%s2546_s7 + $0x8] sm:$0xff]  }
 0x216   : > { %v790_v38 = vrot.slane %v775_v34, 6  ;;  %v788_v39 = vrot.slane %v774_v35, 6  ;;  %v787_v40 = vrot.slane %v773_v36, 6  ;;  %v785_v41 = vrot.slane %v772_v37, 6  ;;  %1740 = vmatprep.subr.bf16.mxu1 %v1962_v14 }
 0x217   : > { %v784_v43 = vsel %vm596_vm6, %v782_v32, %v783_v33  ;;  %v981_v29 = vrot.slane %v2196_v5, 2 }
 0x218   : > { %v786_v44 = vsel %vm596_vm6, %v783_v33, %v785_v41  ;;  %v789_v42 = vsel %vm596_vm6, %v787_v40, %v788_v39  ;;  %v791_v45 = vsel %vm596_vm6, %v788_v39, %v790_v38  ;;  %v1964_v40 = vld [vmem:[%s2546_s7 + $0x10] sm:$0xff]  }
 0x219   : > { %v796_v46 = vpack.c.bf16 %v786_v44, %v784_v43  ;;  %v797_v47 = vpack.c.bf16 %v791_v45, %v789_v42 }
 0x21b   : > { %1730 = vmatprep.mubr.msk.bf16.mxu1 %vm829_vm8, %v796_v46 }
 0x21c   : > { %1731 = vmatmul.mubr.msk.bf16.vlgmr.msra.gmra.mrb[0].mxu1 %vm829_vm8, %v797_v47 }
 0x21d   : > { %1741 = vmatpush3.bf16.msra.mxu1 %v1962_v14 }
 0x21e   : > { %1742 = vmatprep.subr.bf16.mxu1 %v1963_v30 }
 0x221   : > { %1743 = vmatpush3.bf16.msra.mxu1 %v1963_v30 }
 0x222   : > { %1744 = vmatprep.subr.bf16.mxu1 %v1964_v40 }
 0x225   : > { %1745 = vmatpush3.bf16.msra.mxu1 %v1964_v40 }
 0x26a   : > { %v1738_v48 = vpop.f32.mrb[4].mxu0 }
 0x26b   : > { %v942_v49 = vpop.f32.mrb[5].mxu0  ;;  %v951_v55 = vadd.f32 %v1738_v48, %v1654_v52  ;;  %v1965_v48 = vld [vmem:[%s2550_s11] sm:$0xff]  }
 0x26c   : > { %v1739_v50 = vpop.f32.mrb[6].mxu0  ;;  %v943_v57 = vadd.f32 %v1654_v52, %v942_v49  ;;  %1766 = vmatprep.subr.bf16.mxu1 %v1965_v48 }
 0x26d   : > { %v945_v51 = vpop.f32.mrb[7].mxu0  ;;  %v954_v7 = vadd.f32 %v1739_v50, %v1654_v52 }
 0x26e   : > { %v946_v12 = vadd.f32 %v1654_v52, %v945_v51 }
 0x2ef   : > { %v1732_v54 = vpop.f32.mrb[0].mxu1 }
 0x2f0   : > { %v879_v56 = vadd.f32 %v1732_v54, %v1648_v53  ;;  %v870_v11 = vpop.f32.mrb[1].mxu1 }
 0x2f1   : > { %v871_v58 = vadd.f32 %v1648_v53, %v870_v11  ;;  %v1733_v59 = vpop.f32.mrb[2].mxu1 }
 0x2f2   : > { %v887_v60 = vmax.f32 %v879_v56, 0.0  ;;  %v882_v61 = vadd.f32 %v1733_v59, %v1648_v53  ;;  %v873_v62 = vpop.f32.mrb[3].mxu1 }
 0x2f3   : > { %v885_v63 = vmax.f32 %v871_v58, 0.0  ;;  %v874_v3 = vadd.f32 %v1648_v53, %v873_v62 }
 0x2f4   : > { %v959_v4 = vadd.f32 %v951_v55, %v887_v60  ;;  %v888_v10 = vmax.f32 %v882_v61, 0.0 }
 0x2f5   : > { %v957_v9 = vadd.f32 %v943_v57, %v885_v63  ;;  %v886_v13 = vmax.f32 %v874_v3, 0.0 }
 0x2f6   : > { %v963_v8 = vmax.f32 %v959_v4, 0.0  ;;  %v960_v1 = vadd.f32 %v954_v7, %v888_v10 }
 0x2f7   : > { %v961_v2 = vmax.f32 %v957_v9, 0.0  ;;  %v958_v15 = vadd.f32 %v946_v12, %v886_v13 }
 0x2f8   : > { %967 = vst.msk [vmem:[#allocation2 + $0x20] sm:$0xff] %vm583_vm5, %v963_v8  ;;  %v964_v16 = vmax.f32 %v960_v1, 0.0 }
 0x2f9   : > { %965 = vst.msk [vmem:[#allocation2 + $0x8] sm:$0xff] %vm583_vm5, %v961_v2  ;;  %v962_v17 = vmax.f32 %v958_v15, 0.0 }
 0x2fa   : > { %968 = vst.msk [vmem:[#allocation2 + $0x28] sm:$0xff] %vm583_vm5, %v964_v16  ;;  %v2333_v18 = vpack.c.bf16 %v964_v16, %v963_v8 }
 0x2fb   : > { %966 = vst.msk [vmem:[#allocation2 + $0x10] sm:$0xff] %vm583_vm5, %v962_v17  ;;  %v2336_v19 = vpack.c.bf16 %v962_v17, %v961_v2 }
 0x2ff   : > { %v2338_v20 = vld [vmem:[#allocation2 + $0x20] sm:$0xff] }
 0x300   : > { %v987_v21 = vrot.slane %v2338_v20, 2  ;;  %v970_v24 = vld [vmem:[#allocation2 + $0x8] sm:$0xff]  ;;  %v1012_v43 = vrot.slane %v2338_v20, 4 }
 0x301   : > { %v974_v23 = vld [vmem:[#allocation2 + $0x28] sm:$0xff]  ;;  %v1009_v33 = vrot.slane %v970_v24, 4  ;;  %v982_v34 = vrot.slane %v970_v24, 2 }
 0x302   : > { %v989_v25 = vrot.slane %v974_v23, 2  ;;  %v971_v26 = vld [vmem:[#allocation2 + $0x10] sm:$0xff]  ;;  %v988_v32 = vsel %vm552_vm3, %v986_v22, %v987_v21  ;;  %v1013_v39 = vrot.slane %v974_v23, 4 }
 0x303   : > { %v984_v27 = vrot.slane %v971_v26, 2  ;;  %v1010_v28 = vrot.slane %v971_v26, 4  ;;  %v983_v41 = vsel %vm552_vm3, %v981_v29, %v982_v34 }
 0x304   : > { %v990_v31 = vsel %vm552_vm3, %v987_v21, %v989_v25  ;;  %v1014_v45 = vsel %vm639_vm4, %v1012_v43, %v1013_v39 }
 0x305   : > { %v1902_v35 = vpack.i.bf16 %v989_v25, %v990_v31  ;;  %v1897_v36 = vpack.i.bf16 %v988_v32, %v984_v27  ;;  %v1011_v37 = vsel %vm639_vm4, %v1009_v33, %v1010_v28  ;;  %v985_v38 = vsel %vm552_vm3, %v982_v34, %v984_v27  ;;  %v1966_v34 = vld [vmem:[%s2548_s9] sm:$0xff]  }
 0x306   : > { %v1917_v44 = vpack.i.bf16 %v1011_v37, %v1009_v33  ;;  %v1907_v42 = vpack.i.bf16 %v985_v38, %v983_v41  ;;  %v1922_v46 = vpack.i.bf16 %v1013_v39, %v1014_v45  ;;  %v1912_v47 = vpack.i.bf16 %v1012_v43, %v1010_v28  ;;  %1750 = vmatprep.subr.bf16.mxu0 %v1966_v34 }
 0x307   : > { %1903 = vrot.lane.b32.xlu0 %v1902_v35, %s2038_s25  ;;  %1898 = vrot.lane.b32.xlu1 %v1897_v36, %s2038_s25  ;;  %v1967_v35 = vld [vmem:[%s2548_s9 + $0x8] sm:$0xff]  }
 0x308   : > { %1751 = vmatpush3.bf16.msra.mxu0 %v1966_v34 }
 0x309   : > { %1752 = vmatprep.subr.bf16.mxu0 %v1967_v35 }
 0x30b   : > { %1918 = vrot.lane.b32.xlu1 %v1917_v44, %s2555_s26  ;;  %1908 = vrot.lane.b32.xlu0 %v1907_v42, %s2038_s25 }
 0x30c   : > { %1753 = vmatpush3.bf16.msra.mxu0 %v1967_v35 }
 0x30f   : > { %1923 = vrot.lane.b32.xlu1 %v1922_v46, %s2555_s26  ;;  %1913 = vrot.lane.b32.xlu0 %v1912_v47, %s2555_s26  ;;  %v1968_v47 = vld [vmem:[%s2548_s9 + $0x10] sm:$0xff]   ;;  %s1576_s26 = sshll.u32 %s490_s23, 4  ;;  %s2499_s26 = int_to_ptr.vmem [resolvable:$true] %s1576_s26 }
 0x310   : > { %1754 = vmatprep.subr.bf16.mxu0 %v1968_v47  ;;  %p1979_p0 = scmp.lt.s32.totalorder %s2499_s26, %s1977_s1 }
 0x311   : > { %1755 = vmatpush3.bf16.msra.mxu0 %v1968_v47 }
 0x379   : > { %v1904_v49 = vpop.permute.xlu0 %1903  ;;  %v1899_v50 = vpop.permute.xlu1 %1898 }
 0x37a   : > { %v1906_v51 = vunpack.i.h.bf16 %v1904_v49  ;;  %v1905_v52 = vunpack.i.l.bf16 %v1904_v49  ;;  %v1901_v58 = vunpack.i.h.bf16 %v1899_v50  ;;  %v1900_v59 = vunpack.i.l.bf16 %v1899_v50 }
 0x37c   : > { %v1038_v7 = vsel %vm583_vm5, %v974_v23, %v1906_v51  ;;  %v1037_v10 = vsel %vm583_vm5, %v2338_v20, %v1905_v52  ;;  %v1036_v13 = vsel %vm583_vm5, %v2198_v6, %v1901_v58  ;;  %v1035_v8 = vsel %vm583_vm5, %v971_v26, %v1900_v59  ;;  %v1969_v52 = vld [vmem:[%s2548_s9 + $0x18] sm:$0xff]   ;;  %v1970_v58 = vld [vmem:[%s2548_s9 + $0x20] sm:$0xff]  }
 0x37d   : > { %v1919_v53 = vpop.permute.xlu1 %1918  ;;  %v1909_v54 = vpop.permute.xlu0 %1908  ;;  %1756 = vmatprep.subr.bf16.mxu0 %v1969_v52 }
 0x37e   : > { %v1921_v55 = vunpack.i.h.bf16 %v1919_v53  ;;  %v1920_v56 = vunpack.i.l.bf16 %v1919_v53  ;;  %v1911_v11 = vunpack.i.h.bf16 %v1909_v54  ;;  %v1910_v57 = vunpack.i.l.bf16 %v1909_v54  ;;  %1757 = vmatpush3.bf16.msra.mxu0 %v1969_v52 }
 0x37f   : > { %1758 = vmatprep.subr.bf16.mxu0 %v1970_v58 }
 0x380   : > { %v1034_v60 = vsel %vm583_vm5, %v970_v24, %v1911_v11  ;;  %v1033_v61 = vsel %vm583_vm5, %v2196_v5, %v1910_v57 }
 0x381   : > { %v1040_v62 = vsel %vm499_vm0, %v1034_v60, %v1921_v55  ;;  %v1039_v63 = vsel %vm499_vm0, %v1033_v61, %v1920_v56  ;;  %v1924_v3 = vpop.permute.xlu1 %1923  ;;  %v1914_v4 = vpop.permute.xlu0 %1913 }
 0x382   : > { %v1926_v9 = vunpack.i.h.bf16 %v1924_v3  ;;  %v1925_v12 = vunpack.i.l.bf16 %v1924_v3  ;;  %v1916_v1 = vunpack.i.h.bf16 %v1914_v4  ;;  %v1915_v2 = vunpack.i.l.bf16 %v1914_v4  ;;  %1759 = vmatpush3.bf16.msra.mxu0 %v1970_v58 }
 0x383   : > { %v1052_v15 = vrot.slane %v1040_v62, 4  ;;  %v1051_v16 = vrot.slane %v1039_v63, 4 }
 0x384   : > { %v1044_v17 = vsel %vm499_vm0, %v1038_v7, %v1926_v9  ;;  %v1043_v14 = vsel %vm499_vm0, %v1037_v10, %v1925_v12  ;;  %v1042_v24 = vsel %vm499_vm0, %v1036_v13, %v1916_v1  ;;  %v1041_v20 = vsel %vm499_vm0, %v1035_v8, %v1915_v2  ;;  %v1971_v13 = vld [vmem:[%s2548_s9 + $0x28] sm:$0xff]  }
 0x385   : > { %v1059_v21 = vrot.slane %v1044_v17, 4  ;;  %v1057_v23 = vrot.slane %v1043_v14, 4  ;;  %v1056_v25 = vrot.slane %v1042_v24, 4  ;;  %v1054_v27 = vrot.slane %v1041_v20, 4  ;;  %1760 = vmatprep.subr.bf16.mxu0 %v1971_v13 }
 0x386   : > { %v1053_v30 = vsel %vm639_vm4, %v1051_v16, %v1052_v15  ;;  %1761 = vmatpush3.bf16.msra.mxu0 %v1971_v13 }
 0x387   : > { %v1060_v28 = vsel %vm639_vm4, %v1057_v23, %v1059_v21  ;;  %v1058_v26 = vsel %vm639_vm4, %v1056_v25, %v1057_v23  ;;  %v1055_v31 = vsel %vm639_vm4, %v1052_v15, %v1054_v27 }
 0x388   : > { %v1065_v32 = vpack.c.bf16 %v1055_v31, %v1053_v30  ;;  %v1066_v33 = vpack.c.bf16 %v1060_v28, %v1058_v26 }
 0x38a   : > { %1746 = vmatprep.mubr.msk.bf16.mxu1 %vm829_vm8, %v1065_v32 }
 0x38b   : > { %1747 = vmatmul.mubr.msk.bf16.vlgmr.msra.gmra.mrb[4].mxu1 %vm829_vm8, %v1066_v33 }
 0x38c   : > { %1768 = vmatprep.mubr.msk.bf16.mxu1 %vm583_vm5, %v2336_v19  ;;  %1767 = vmatpush3.bf16.msra.mxu1 %v1965_v48  ;;  %v1657_v19 = vld [vmem:[%s2547_s8] ss:$0 sm:$0xff] }
 0x393   : > { %1769 = vmatmul.mubr.msk.bf16.vlgmr.msra.gmra.mrb[8].mxu1 %vm583_vm5, %v2333_v18 }
 0x394   : > { %1780 = vmatprep.mubr.msk.f32.mxu1 %vm2042_vm11, %v2036_v0 }
 0x45e   : > { %v1748_v36 = vpop.f32.mrb[4].mxu1 }
 0x45f   : > { %v1147_v37 = vadd.f32 %v1748_v36, %v1657_v19  ;;  %v1138_v38 = vpop.f32.mrb[5].mxu1 }
 0x460   : > { %v1139_v18 = vadd.f32 %v1657_v19, %v1138_v38  ;;  %v1749_v39 = vpop.f32.mrb[6].mxu1 }
 0x461   : > { %v1155_v40 = vmax.f32 %v1147_v37, 0.0  ;;  %v1150_v41 = vadd.f32 %v1749_v39, %v1657_v19  ;;  %v1141_v43 = vpop.f32.mrb[7].mxu1 }
 0x462   : > { %v1153_v44 = vmax.f32 %v1139_v18, 0.0  ;;  %v1142_v42 = vadd.f32 %v1657_v19, %v1141_v43 }
 0x463   : > { %1159 = vst.msk [vmem:[#allocation2 + $0x20] sm:$0xff] %vm499_vm0, %v1155_v40  ;;  %v1156_v45 = vmax.f32 %v1150_v41, 0.0 }
 0x464   : > { %1157 = vst.msk [vmem:[#allocation2 + $0x8] sm:$0xff] %vm499_vm0, %v1153_v44  ;;  %v1154_v46 = vmax.f32 %v1142_v42, 0.0 }
 0x465   : > { %1160 = vst.msk [vmem:[#allocation2 + $0x28] sm:$0xff] %vm499_vm0, %v1156_v45 }
 0x466   : > { %1158 = vst.msk [vmem:[#allocation2 + $0x10] sm:$0xff] %vm499_vm0, %v1154_v46  ;;  %v2413_v48 = vpop.f32.mrb[8].mxu1 }
 0x467   : > { %v2415_v49 = vpop.f32.mrb[9].mxu1 }
 0x468   : > { %v2417_v50 = vpop.f32.mrb[10].mxu1 }
 0x469   : > { %v2419_v51 = vpop.f32.mrb[11].mxu1 }
 0x46a   : > { %v1165_v53 = vld [vmem:[#allocation2 + $0x20] sm:$0xff] }
 0x46b   : > { %v1179_v54 = vrot.slane %v1165_v53, 2  ;;  %v1162_v56 = vld [vmem:[#allocation2 + $0x8] sm:$0xff]  ;;  %v1204_v8 = vrot.slane %v1165_v53, 4 }
 0x46c   : > { %v1166_v55 = vld [vmem:[#allocation2 + $0x28] sm:$0xff]  ;;  %v1201_v63 = vrot.slane %v1162_v56, 4  ;;  %v1174_v3 = vrot.slane %v1162_v56, 2 }
 0x46d   : > { %v1181_v11 = vrot.slane %v1166_v55, 2  ;;  %v1163_v57 = vld [vmem:[#allocation2 + $0x10] sm:$0xff]  ;;  %v1180_v62 = vsel %vm552_vm3, %v986_v22, %v1179_v54  ;;  %v1205_v12 = vrot.slane %v1166_v55, 4 }
 0x46e   : > { %v1176_v59 = vrot.slane %v1163_v57, 2  ;;  %v1202_v60 = vrot.slane %v1163_v57, 4  ;;  %v1175_v22 = vsel %vm552_vm3, %v981_v29, %v1174_v3 }
 0x46f   : > { %v1182_v61 = vsel %vm552_vm3, %v1179_v54, %v1181_v11  ;;  %v1206_v15 = vsel %vm639_vm4, %v1204_v8, %v1205_v12 }
 0x470   : > { %v1932_v4 = vpack.i.bf16 %v1181_v11, %v1182_v61  ;;  %v1927_v7 = vpack.i.bf16 %v1180_v62, %v1176_v59  ;;  %v1203_v10 = vsel %vm639_vm4, %v1201_v63, %v1202_v60  ;;  %v1177_v9 = vsel %vm552_vm3, %v1174_v3, %v1176_v59  ;;  %v1473_v61 = vld [vmem:[%s2552_s13] sm:$0xff]  ;;  %v1474_v62 = vld [vmem:[%s2552_s13 + $0x8] sm:$0xff] }
 0x471   : > { %v1942_v1 = vpack.i.bf16 %v1203_v10, %v1201_v63  ;;  %v1937_v2 = vpack.i.bf16 %v1177_v9, %v1175_v22  ;;  %v1952_v16 = vpack.i.bf16 %v1205_v12, %v1206_v15  ;;  %v1947_v17 = vpack.i.bf16 %v1204_v8, %v1202_v60  ;;  %v1663_v9 = vld [vmem:[%s2549_s10] ss:$0 sm:$0xff] }
 0x472   : > { %1933 = vrot.lane.b32.xlu0 %v1932_v4, %s2569_s30  ;;  %1928 = vrot.lane.b32.xlu1 %v1927_v7, %s2569_s30  ;;  %v1784_v63 = vpack.c.bf16 %v1474_v62, %v1473_v61  ;;  %v2041_v3 = vmov 0.0|0.0   ;;  %v1475_v4 = vld [vmem:[%s2552_s13 + $0x10] sm:$0xff]  ;;  %v1476_v7 = vld [vmem:[%s2552_s13 + $0x18] sm:$0xff] }
 0x473   : > { %1783 = vmatprep.subr.bf16.mxu1 %v2041_v3  ;;  %v1787_v10 = vpack.c.bf16 %v1476_v7, %v1475_v4  ;;  %v1672_v12 = vld [vmem:[%s2551_s12] ss:$0 sm:$0xff] }
 0x474   : > { %1785 = vmatpush3.bf16.msra.mxu1 %v1784_v63  ;;  %v1441_v15 = vadd.f32 %v2413_v48, %v1672_v12  ;;  %v1433_v0 = vadd.f32 %v1672_v12, %v2415_v49 }
 0x475   : > { %1786 = vmatprep.subr.bf16.mxu1 %v2041_v3 }
 0x476   : > { %1943 = vrot.lane.b32.xlu1 %v1942_v1, %s2040_s16  ;;  %1938 = vrot.lane.b32.xlu0 %v1937_v2, %s2569_s30  ;;  %s1563_s30 = scalar_lea.sflag [#allocation4], %s488_s0 }
 0x478   : > { %1788 = vmatpush3.bf16.msra.mxu1 %v1787_v10 }
 0x47a   : > { %1953 = vrot.lane.b32.xlu1 %v1952_v16, %s2040_s16  ;;  %1948 = vrot.lane.b32.xlu0 %v1947_v17, %s2040_s16  ;;  %s1972_s16 = scalar_lea.vmem %s2499_s26, 32 }
 0x47b   : > { %p1973_p11 = scmp.ne.s32.totalorder %s2499_s26, %s1972_s16  ;;  %p1980_p1 = scmp.lt.s32.totalorder %s1978_s4, %s1972_s16 }
 0x47d   : > { %p1974_p12 = pnand %p1973_p11, %p2162_p5  ;;  %p1981_p2 = por %p1980_p1, %p1979_p0 }
 0x47f   : > { %p1975_p13 = pneg %p1974_p12 }
 0x481   : > { %p1982_p3 = pnand %p1981_p2, %p1975_p13 }
 0x4e4   : > { %v1934_v14 = vpop.permute.xlu0 %1933  ;;  %v1929_v21 = vpop.permute.xlu1 %1928 }
 0x4e5   : > { %v1936_v23 = vunpack.i.h.bf16 %v1934_v14  ;;  %v1935_v24 = vunpack.i.l.bf16 %v1934_v14  ;;  %v1931_v30 = vunpack.i.h.bf16 %v1929_v21  ;;  %v1930_v31 = vunpack.i.l.bf16 %v1929_v21 }
 0x4e7   : > { %v1230_v37 = vsel %vm499_vm0, %v1166_v55, %v1936_v23  ;;  %v1229_v38 = vsel %vm499_vm0, %v1165_v53, %v1935_v24  ;;  %v1228_v40 = vsel %vm499_vm0, %v2198_v6, %v1931_v30  ;;  %v1227_v41 = vsel %vm499_vm0, %v1163_v57, %v1930_v31 }
 0x4e8   : > { %v1944_v29 = vpop.permute.xlu1 %1943  ;;  %v1939_v20 = vpop.permute.xlu0 %1938  ;;  %v1444_v24 = vadd.f32 %v2417_v50, %v1672_v12 }
 0x4e9   : > { %v1946_v25 = vunpack.i.h.bf16 %v1944_v29  ;;  %v1945_v27 = vunpack.i.l.bf16 %v1944_v29  ;;  %v1941_v28 = vunpack.i.h.bf16 %v1939_v20  ;;  %v1940_v26 = vunpack.i.l.bf16 %v1939_v20 }
 0x4eb   : > { %v1226_v32 = vsel %vm499_vm0, %v1162_v56, %v1941_v28  ;;  %v1225_v33 = vsel %vm499_vm0, %v2196_v5, %v1940_v26 }
 0x4ec   : > { %v1233_v34 = vsel %vm1231_vm9, %v1226_v32, %v1946_v25  ;;  %v1232_v35 = vsel %vm1231_vm9, %v1225_v33, %v1945_v27  ;;  %v1954_v19 = vpop.permute.xlu1 %1953  ;;  %v1949_v36 = vpop.permute.xlu0 %1948  ;;  %v1436_v25 = vadd.f32 %v1672_v12, %v2419_v51 }
 0x4ed   : > { %v1956_v18 = vunpack.i.h.bf16 %v1954_v19  ;;  %v1955_v39 = vunpack.i.l.bf16 %v1954_v19  ;;  %v1951_v43 = vunpack.i.h.bf16 %v1949_v36  ;;  %v1950_v44 = vunpack.i.l.bf16 %v1949_v36 }
 0x4ee   : > { %v1245_v5 = vrot.slane %v1233_v34, 4  ;;  %v1244_v42 = vrot.slane %v1232_v35, 4 }
 0x4ef   : > { %v1237_v45 = vsel %vm1231_vm9, %v1230_v37, %v1956_v18  ;;  %v1236_v46 = vsel %vm1231_vm9, %v1229_v38, %v1955_v39  ;;  %v1235_v54 = vsel %vm1231_vm9, %v1228_v40, %v1951_v43  ;;  %v1234_v53 = vsel %vm1231_vm9, %v1227_v41, %v1950_v44 }
 0x4f0   : > { %v1252_v47 = vrot.slane %v1237_v45, 4  ;;  %v1250_v52 = vrot.slane %v1236_v46, 4  ;;  %v1249_v55 = vrot.slane %v1235_v54, 4  ;;  %v1247_v56 = vrot.slane %v1234_v53, 4 }
 0x4f1   : > { %v1246_v57 = vsel %vm639_vm4, %v1244_v42, %v1245_v5 }
 0x4f2   : > { %v1253_v6 = vsel %vm639_vm4, %v1250_v52, %v1252_v47  ;;  %v1251_v11 = vsel %vm639_vm4, %v1249_v55, %v1250_v52  ;;  %v1248_v58 = vsel %vm639_vm4, %v1245_v5, %v1247_v56  ;;  %v1676_v47 = vld [vmem:[%s2553_s14] ss:$0 sm:$0xff] }
 0x4f3   : > { %v1259_v59 = vpack.c.bf16 %v1253_v6, %v1251_v11  ;;  %v1258_v60 = vpack.c.bf16 %v1248_v58, %v1246_v57 }
 0x4f5   : > { %1762 = vmatprep.mubr.msk.bf16.mxu0 %vm1315_vm10, %v1258_v60 }
 0x4f6   : > { %1763 = vmatmul.mubr.msk.bf16.vlgmr.msra.gmra.mrb[8].mxu0 %vm1315_vm10, %v1259_v59 }
 0x5c9   : > { %v1764_v13 = vpop.f32.mrb[8].mxu0 }
 0x5ca   : > { %v1365_v22 = vadd.f32 %v1764_v13, %v1663_v9  ;;  %v1356_v8 = vpop.f32.mrb[9].mxu0 }
 0x5cb   : > { %v1357_v1 = vadd.f32 %v1663_v9, %v1356_v8  ;;  %v1765_v2 = vpop.f32.mrb[10].mxu0 }
 0x5cc   : > { %v1373_v16 = vmax.f32 %v1365_v22, 0.0  ;;  %v1368_v17 = vadd.f32 %v1765_v2, %v1663_v9  ;;  %v1359_v14 = vpop.f32.mrb[11].mxu0 }
 0x5cd   : > { %v1371_v21 = vmax.f32 %v1357_v1, 0.0  ;;  %v1360_v23 = vadd.f32 %v1663_v9, %v1359_v14 }
 0x5ce   : > { %v1449_v29 = vadd.f32 %v1441_v15, %v1373_v16  ;;  %v1374_v20 = vmax.f32 %v1368_v17, 0.0 }
 0x5cf   : > { %v1447_v27 = vadd.f32 %v1433_v0, %v1371_v21  ;;  %v1372_v28 = vmax.f32 %v1360_v23, 0.0 }
 0x5d0   : > { %v1453_v26 = vmax.f32 %v1449_v29, 0.0  ;;  %v1450_v30 = vadd.f32 %v1444_v24, %v1374_v20 }
 0x5d1   : > { %v1451_v31 = vmax.f32 %v1447_v27, 0.0  ;;  %v1448_v32 = vadd.f32 %v1436_v25, %v1372_v28 }
 0x5d2   : > { %v1454_v48 = vmax.f32 %v1450_v30, 0.0  ;;  %v1464_v34 = vsel %vm499_vm0, %v1453_v26, 0.0 }
 0x5d3   : > { %v1452_v33 = vmax.f32 %v1448_v32, 0.0  ;;  %v1455_v35 = vsel %vm499_vm0, %v1451_v31, 0.0 }
 0x5d4   : > { %v1465_v49 = vsel %vm499_vm0, %v1454_v48, 0.0 }
 0x5d5   : > { %v1466_v19 = vadd.f32 %v1465_v49, %v1464_v34  ;;  %v1456_v50 = vsel %vm499_vm0, %v1452_v33, 0.0 }
 0x5d6   : > { %v1457_v36 = vadd.f32 %v1456_v50, %v1455_v35 }
 0x5d7   : > { %v1467_v51 = vrot.slane %v1466_v19, 4 }
 0x5d8   : > { %v1458_v37 = vrot.slane %v1457_v36, 4 }
 0x5d9   : > { %v1468_v38 = vadd.f32 %v1467_v51, %v1466_v19 }
 0x5da   : > { %v1459_v18 = vadd.f32 %v1458_v37, %v1457_v36 }
 0x5db   : > { %v1469_v39 = vrot.slane %v1468_v38, 2 }
 0x5dc   : > { %v1460_v40 = vrot.slane %v1459_v18, 2 }
 0x5dd   : > { %v1470_v41 = vadd.f32 %v1469_v39, %v1468_v38 }
 0x5de   : > { %v1461_v43 = vadd.f32 %v1460_v40, %v1459_v18 }
 0x5df   : > { %v1471_v44 = vrot.slane %v1470_v41, 1 }
 0x5e0   : > { %v1462_v5 = vrot.slane %v1461_v43, 1 }
 0x5e1   : > { %v1472_v42 = vadd.f32 %v1471_v44, %v1470_v41 }
 0x5e2   : > { %v1463_v45 = vadd.f32 %v1462_v5, %v1461_v43 }
 0x5e4   : > { %v1487_v46 = vsel %vm1486_vm12, %v1472_v42, %v1463_v45 }
 0x5e5   : > { %1781 = vmatmul.mubr.msk.f32.vlgmr.msra.gmra.mrb[12].mxu1 %vm499_vm0, %v1487_v46 }
 0x6b8   : > { %v1556_v52 = vpop.f32.mrb[12].mxu1 }
 0x6b9   : > { %v1557_v54 = vadd.f32 %v1676_v47, %v1556_v52  ;;  %v1782_v53 = vpop.f32.mrb[13].mxu1 }
 0x6bb   : > { %1561 = vst.msk [vmem:[%s490_s23] sm:$0x3] %vm1560_vm13, %v1557_v54 }
 0x6bc   : > { %1985 = shalt.err (!%p1982_p3)
}
 0x6bd   : > { %s1986_s2 = scalar_lea.hbm %s2497_s3, 32  ;;  %s1990_s23 = scalar_lea.hbm %s2554_s15, 64 }
 0x6be   : > { %p1987_p4 = scmp.ne.s32.totalorder %s2497_s3, %s1986_s2  ;;  %p1991_p9 = scmp.lt.u32.totalorder %s2497_s3, %s2554_s15 }
 0x6bf   : > { %p1992_p10 = scmp.lt.u32.totalorder %s1990_s23, %s1986_s2  ;;  %p1994_p12 = scmp.lt.u32.totalorder %s1986_s2, %s2497_s3 }
 0x6c0   : > { %p1988_p7 = pnand %p1987_p4, %p2162_p5 }
 0x6c1   : > { %p1993_p11 = por %p1992_p10, %p1991_p9 }
 0x6c2   : > { %p1989_p8 = pneg %p1988_p7 }
 0x6c3   : > { %p1995_p13 = por %p1994_p12, %p1993_p11 }
 0x6c5   : > { %p1996_p0 = pnand %p1995_p13, %p1989_p8 }
 0x6c7   : > { %1999 = shalt.err (!%p1996_p0)
}
 0x6c8   : > { %1791 = dma.vmem_to_hbm [thread:$0]  (%p2162_p5), %s2499_s26, 32, %s2497_s3, %s1563_s30  }
 0x6c9 PF: > { %p1797_p1 = scmp.ge.s32.totalorder %s2034_s21, 2  ;;  %s1588_s4 = sand.u32 1, %s2022_s18  }
 0x6ca   : > { %s1589_s16 = scalar_lea.sflag [#allocation4], %s1588_s4 }
 0x6cb   : > { %p1794_p2 = pnand %p1797_p1, %p2166_p6 }
 0x6cd   : > { %2017 = dma.done.wait (!%p1794_p2), %s1589_s16, 32  }
 0x6ce   : > { %2019 = vsyncadd (!%p1794_p2), %s1589_s16, 4294967264  ;;  %p25_p3 = scmp.ge.s32.totalorder %s2149_s24, 4   ;;  %s2570_s18 = smov %s2026_s19 }
 0x6cf   : > { %s2571_s19 = smov %s2030_s20  ;;  %s2572_s20 = smov %s2160_s27 }
 0x6d0   : > { %s2573_s21 = smov %s2149_s24  ;;  %27 = sbr.rel (!%p25_p3) target bundleno = 9 (0x9), region = 115 }
 0x6d7   :  { %1594 = vsyncpa [#allocation4], 1 }
 0x6d8   :  { %1596 = vsyncpa [#allocation4 + $0x1], 1 }

</bundles_post_ra>
